<compile_context>
chip_gen: v6e
topology: v6e:2x2x1
jax: 0.10.0
libtpu: 0.0.40
codegen_flags: <defaults>
</compile_context>

<pallas_src>
import math

import jax
import jax.numpy as jnp
from jax import lax
from jax.experimental import pallas as pl
from jax.experimental.pallas import tpu as pltpu


def _round_up(x: int, m: int) -> int:
    return ((x + m - 1) // m) * m


def _defuzz_kernel(act_ref, cons_num_ref, cons_den_ref, out_ref):
    # act_ref      : (TBp, p*R)  p packed batch rows per lane row, f32
    # cons_num_ref : (p*R, p*O)  block-diagonal consequence coefficients
    # cons_den_ref : (p*R, p*O)  block-diagonal ones (per-row firing-strength sum)
    # out_ref      : (TBp, p*O)  packed defuzzified outputs
    act = act_ref[...]
    num = jnp.dot(act, cons_num_ref[...],
                  preferred_element_type=jnp.float32,
                  precision=lax.Precision.HIGHEST)
    den = jnp.dot(act, cons_den_ref[...],
                  preferred_element_type=jnp.float32,
                  precision=lax.Precision.HIGHEST)
    # Exact divide: HBM-bound kernel, the VPU divide is fully hidden. A tiny
    # eps keeps all-zero (or boundary-padded) rows finite without affecting
    # any normally-fired row at f32 precision.
    out_ref[...] = (num / (den + jnp.float32(1e-30))).astype(out_ref.dtype)


def _choose_batch_tile(bp: int, pr: int, po: int) -> int:
    """Packed-batch tile size from the lane-padded, double-buffered footprint."""
    lanes_act = _round_up(pr, 128)          # minor dim padded to 128 lanes (f32)
    lanes_out = _round_up(po, 128)
    bytes_per_row = 2 * 4 * (lanes_act + lanes_out)   # 2 buffers each for in + out
    budget = 16 * 1024 * 1024               # block budget safe for v5e/v6e/v7x
    tbp = budget // bytes_per_row
    tbp = min(tbp, 8192)                    # multi-MiB tiles already amortize the
                                            # ~0.35 us per-step pipeline overhead
    # Keep >= ~8 grid steps (megacore sharding / pipelining) when batch allows.
    tbp = min(tbp, max(512, pl.cdiv(bp, 8)))
    # Never bigger than the (8-row aligned) batch itself.
    tbp = min(tbp, _round_up(bp, 8))
    return max(8, (tbp // 8) * 8)


def defuzzify(rule_activations: jax.Array, consequences: jax.Array) -> jax.Array:
    """Weighted-average (zero-order TSK) defuzzification via a Pallas TPU kernel."""
    B, R = rule_activations.shape
    R2, O = consequences.shape
    assert R == R2, "rule count mismatch between activations and consequences"

    act = rule_activations.astype(jnp.float32)
    cons = consequences.astype(jnp.float32)

    # Rows-per-lane packing factor: must divide B so the reshape is a free
    # contiguous bitcast (no padding copy of the dominant activation stream).
    p = math.gcd(B, max(1, 128 // R)) if R <= 128 else 1
    bp, pr, po = B // p, p * R, p * O

    act_packed = act.reshape(bp, pr)                         # free: contiguous

    # Block-diagonal consequence matrices (tiny, one-time): one MXU matmul
    # yields all packed numerators, the other the per-row firing sums.
    eye = jnp.eye(p, dtype=jnp.float32)
    cons_num = jnp.kron(eye, cons)                           # (p*R, p*O)
    cons_den = jnp.kron(eye, jnp.ones((R, O), jnp.float32))  # (p*R, p*O)

    tbp = _choose_batch_tile(bp, pr, po)
    grid = (pl.cdiv(bp, tbp),)   # ragged tail -> masked boundary block, no pad copy

    # Explicit VMEM request: lane-padded double-buffered blocks + headroom.
    lanes_act = _round_up(pr, 128)
    lanes_out = _round_up(po, 128)
    sub_cons = _round_up(pr, 8)
    vmem_bytes = 4 * (2 * tbp * lanes_act          # streamed activations (x2 bufs)
                      + 2 * tbp * lanes_out        # output block (x2 bufs)
                      + 4 * sub_cons * lanes_out)  # two resident cons blocks (x2)
    vmem_limit = int(min(vmem_bytes + (4 << 20), 100 << 20))

    cost = pl.CostEstimate(
        flops=2 * 2 * bp * pr * po,                # two matmuls
        transcendentals=0,
        bytes_accessed=4 * (bp * pr + 2 * pr * po + bp * po),
    )

    out_packed = pl.pallas_call(
        _defuzz_kernel,
        out_shape=jax.ShapeDtypeStruct((bp, po), jnp.float32),
        grid=grid,
        in_specs=[
            pl.BlockSpec((tbp, pr), lambda i: (i, 0)),    # streamed activations
            pl.BlockSpec((pr, po), lambda i: (0, 0)),     # resident consequences
            pl.BlockSpec((pr, po), lambda i: (0, 0)),     # resident ones (denominator)
        ],
        out_specs=pl.BlockSpec((tbp, po), lambda i: (i, 0)),
        compiler_params=pltpu.CompilerParams(
            dimension_semantics=("parallel",),
            vmem_limit_bytes=vmem_limit,
        ),
        cost_estimate=cost,
    )(act_packed, cons_num, cons_den)

    return out_packed.reshape(B, O)                          # free: contiguous


class Defuzzification:
    """JAX/Pallas port of the (zero-order TSK) Defuzzification forward pass."""
    # TODO(synk): torch-side `.to(device)` plumbing and RuleBase wiring are
    # framework glue with no compute; only the forward pass is implemented.

    def __init__(self, n_rules: int, n_outputs: int, key: jax.Array):
        # `source` in the torch module is an ndarray of rule consequences;
        # initialize deterministically in-script.
        self.consequences = jax.random.normal(
            key, (n_rules, n_outputs), dtype=jnp.float32
        )

    def __call__(self, rule_activations: jax.Array) -> jax.Array:
        return defuzzify(rule_activations, self.consequences)


if __name__ == "__main__":
    key = jax.random.PRNGKey(0)
    k_act, k_cons = jax.random.split(key)

    batch, n_rules, n_outputs = 8, 32, 4

    # Rule activations (firing levels) are memberships in [0, 1].
    rule_activations = jax.random.uniform(
        k_act, (batch, n_rules), dtype=jnp.float32
    )

    defuzz = Defuzzification(n_rules, n_outputs, k_cons)
    out = jax.block_until_ready(defuzz(rule_activations))

    # Reference check in plain JAX (same high-precision matmul).
    ref = jnp.dot(rule_activations, defuzz.consequences,
                  precision=lax.Precision.HIGHEST) / jnp.sum(
        rule_activations, axis=-1, keepdims=True)

    assert out.shape == (batch, n_outputs)
    assert jnp.allclose(out, ref, atol=1e-5, rtol=1e-4)

    print("KERNEL_OK")
</pallas_src>

<mosaic_0001>
module attributes {stable_mosaic.version = 11 : i64} {
  func.func @_defuzz_kernel(%arg0: i32, %arg1: memref<8x128xf32, #tpu.memory_space<vmem>>, %arg2: memref<128x16xf32, #tpu.memory_space<vmem>>, %arg3: memref<128x16xf32, #tpu.memory_space<vmem>>, %arg4: memref<8x16xf32, #tpu.memory_space<vmem>>) attributes {dimension_semantics = [#tpu.dimension_semantics<parallel>], iteration_bounds = array<i64: 1>, scalar_prefetch = 0 : i64, scratch_operands = 0 : i64, tpu.core_type = #tpu.core_type<tc>, window_params = [{transform_indices = @transform_0, window_bounds = array<i64: 8, 128>}, {pipeline_mode = #tpu.pipeline_mode<synchronous>, transform_indices = @transform_1, window_bounds = array<i64: 128, 16>}, {pipeline_mode = #tpu.pipeline_mode<synchronous>, transform_indices = @transform_2, window_bounds = array<i64: 128, 16>}, {transform_indices = @transform_3, window_bounds = array<i64: 8, 16>}]} {
    %c0 = arith.constant 0 : index
    %c0_0 = arith.constant 0 : index
    %0 = vector.load %arg1[%c0, %c0_0] : memref<8x128xf32, #tpu.memory_space<vmem>>, vector<8x128xf32>
    %c0_1 = arith.constant 0 : index
    %c0_2 = arith.constant 0 : index
    %1 = vector.load %arg2[%c0_1, %c0_2] : memref<128x16xf32, #tpu.memory_space<vmem>>, vector<128x16xf32>
    %cst = arith.constant dense<0.000000e+00> : vector<8x16xf32>
    %2 = tpu.matmul %0, %1, %cst {dimension_numbers = #tpu.dot_dimension_numbers<[1], [0], [0], [1], [0, 0, 1, 1], [], []>, precision = #tpu.contract_precision<fp32>} : vector<8x128xf32>, vector<128x16xf32>, vector<8x16xf32> -> vector<8x16xf32>
    %c0_3 = arith.constant 0 : index
    %c0_4 = arith.constant 0 : index
    %3 = vector.load %arg3[%c0_3, %c0_4] : memref<128x16xf32, #tpu.memory_space<vmem>>, vector<128x16xf32>
    %cst_5 = arith.constant dense<0.000000e+00> : vector<8x16xf32>
    %4 = tpu.matmul %0, %3, %cst_5 {dimension_numbers = #tpu.dot_dimension_numbers<[1], [0], [0], [1], [0, 0, 1, 1], [], []>, precision = #tpu.contract_precision<fp32>} : vector<8x128xf32>, vector<128x16xf32>, vector<8x16xf32> -> vector<8x16xf32>
    %cst_6 = arith.constant 1.000000e-30 : f32
    %5 = vector.broadcast %cst_6 : f32 to vector<8x16xf32>
    %6 = arith.addf %4, %5 : vector<8x16xf32>
    %7 = arith.divf %2, %6 : vector<8x16xf32>
    %c0_7 = arith.constant 0 : index
    %c0_8 = arith.constant 0 : index
    %8 = vector.load %arg4[%c0_7, %c0_8] : memref<8x16xf32, #tpu.memory_space<vmem>>, vector<8x16xf32>
    tpu.vector_store %arg4[%c0_7, %c0_8], %7 {strides = array<i32>} : memref<8x16xf32, #tpu.memory_space<vmem>>, vector<8x16xf32>,
    return
  }
  func.func @transform_0(%arg0: i32) -> (i32, i32) {
    %c0_i32 = arith.constant 0 : i32
    %c0_i32_0 = arith.constant 0 : i32
    return %arg0, %c0_i32 : i32, i32
  }
  func.func @transform_1(%arg0: i32) -> (i32, i32) {
    %c0_i32 = arith.constant 0 : i32
    %c0_i32_0 = arith.constant 0 : i32
    %c0_i32_1 = arith.constant 0 : i32
    return %c0_i32, %c0_i32_0 : i32, i32
  }
  func.func @transform_2(%arg0: i32) -> (i32, i32) {
    %c0_i32 = arith.constant 0 : i32
    %c0_i32_0 = arith.constant 0 : i32
    %c0_i32_1 = arith.constant 0 : i32
    return %c0_i32, %c0_i32_0 : i32, i32
  }
  func.func @transform_3(%arg0: i32) -> (i32, i32) {
    %c0_i32 = arith.constant 0 : i32
    %c0_i32_0 = arith.constant 0 : i32
    return %arg0, %c0_i32 : i32, i32
  }
}

</mosaic_0001>

<bundles_post_ra>
// kernel: tpu_custom_call.1
= control target key start
LH: loop header
LB: loop body
LE: loop exit
PB: predicated region body
PF: predicated region fallthrough
CT: control target
= control target key end

     0   :  { %8 = vsyncpa [#allocation3], 0  ;;  %v2003_v2 = vmov 0.0   ;;  %vm2004_vm0 = vmmov 0   ;;  %vm1332_vm1 = vcmask 130048   ;;  %s2850_s0 = inlined_call_operand.vmem [shape: f32[2,128], index: 0, kind: input, shape index: {}]   ;;  %s2851_s1 = inlined_call_operand.vmem [shape: f32[128,16], index: 1, kind: input, shape index: {}]   ;;  %s2852_s2 = inlined_call_operand.vmem [shape: f32[128,16], index: 2, kind: input, shape index: {}]   ;;  %s2853_s3 = inlined_call_operand.hbm [shape: f32[2,16], index: 3, kind: output, shape index: {}]  }
   0x1   :  { %v31_v0 = vld [vmem:[%s2851_s1 + $0x78] sm:$0xff]  ;;  %v30_v1 = vld [vmem:[%s2851_s1 + $0x70] sm:$0xff]  ;;  %1554 = vmatprep.subr.mxu0 %v2003_v2  ;;  %v29_v5 = vld [vmem:[%s2851_s1 + $0x68] sm:$0xff]  ;;  %1589 = vmatprep.subr.mxu1 %v2003_v2 }
   0x2   :  { %v2035_v3 = vand.u32 4294901760, %v31_v0  ;;  %v2037_v4 = vand.u32 4294901760, %v30_v1  ;;  %v28_v6 = vld [vmem:[%s2851_s1 + $0x60] sm:$0xff]  ;;  %v27_v7 = vld [vmem:[%s2851_s1 + $0x58] sm:$0xff]  ;;  %v2049_v8 = vand.u32 4294901760, %v29_v5  ;;  %v26_v11 = vld [vmem:[%s2851_s1 + $0x50] sm:$0xff]  ;;  %1586 = vmatprep.mubr.msk.f32.mxu0 %vm2004_vm0, %v2003_v2  ;;  %1621 = vmatprep.mubr.msk.f32.mxu1 %vm2004_vm0, %v2003_v2 }
   0x3   :  { %v2051_v9 = vand.u32 4294901760, %v28_v6  ;;  %v2053_v10 = vand.u32 4294901760, %v27_v7  ;;  %v25_v12 = vld [vmem:[%s2851_s1 + $0x48] sm:$0xff]  ;;  %v24_v13 = vld [vmem:[%s2851_s1 + $0x40] sm:$0xff]  ;;  %v2072_v15 = vand.u32 4294901760, %v26_v11  ;;  %v23_v18 = vld [vmem:[%s2851_s1 + $0x38] sm:$0xff] }
   0x4   :  { %1555 = vmatpush3.msra.mxu0 %v2035_v3  ;;  %v2070_v14 = vsub.f32 %v31_v0, %v2035_v3  ;;  %v2075_v16 = vsub.f32 %v30_v1, %v2037_v4  ;;  %v2077_v17 = vand.u32 4294901760, %v25_v12  ;;  %v2084_v19 = vsub.f32 %v29_v5, %v2049_v8  ;;  %v22_v28 = vld [vmem:[%s2851_s1 + $0x30] sm:$0xff]  ;;  %v21_v36 = vld [vmem:[%s2851_s1 + $0x28] sm:$0xff]  ;;  %v20_v42 = vld [vmem:[%s2851_s1 + $0x20] sm:$0xff] }
   0x5   :  { %1556 = vmatprep.subr.mxu0 %v2003_v2  ;;  %v2087_v20 = vsub.f32 %v28_v6, %v2051_v9  ;;  %v2092_v23 = vand.u32 4294901760, %v24_v13  ;;  %v2095_v24 = vsub.f32 %v27_v7, %v2053_v10  ;;  %v2100_v27 = vand.u32 4294901760, %v23_v18  ;;  %v19_v49 = vld [vmem:[%s2851_s1 + $0x18] sm:$0xff]  ;;  %v15_v50 = vld [vmem:[%s2850_s0] sm:$0xff]  ;;  %v18_v57 = vld [vmem:[%s2851_s1 + $0x10] sm:$0xff] }
   0x6   :  { %1557 = vmatpush3.msra.mxu0 %v2037_v4  ;;  %v126_v21 = vand.u32 4294901760, %v2070_v14  ;;  %v133_v22 = vand.u32 4294901760, %v2075_v16  ;;  %v140_v25 = vand.u32 4294901760, %v2084_v19  ;;  %v2106_v29 = vsub.f32 %v26_v11, %v2072_v15  ;;  %v17_v63 = vld [vmem:[%s2851_s1 + $0x8] sm:$0xff]  ;;  %v16_v6 = vld [vmem:[%s2851_s1] sm:$0xff] }
   0x7   :  { %1558 = vmatprep.subr.mxu0 %v2003_v2  ;;  %v147_v26 = vand.u32 4294901760, %v2087_v20  ;;  %v154_v32 = vand.u32 4294901760, %v2095_v24  ;;  %v2117_v33 = vsub.f32 %v25_v12, %v2077_v17  ;;  %v2131_v40 = vand.u32 4294901760, %v22_v28 }
   0x8   :  { %1559 = vmatpush3.msra.mxu0 %v2049_v8  ;;  %v127_v30 = vsub.f32 %v2070_v14, %v126_v21  ;;  %v134_v31 = vsub.f32 %v2075_v16, %v133_v22  ;;  %v141_v34 = vsub.f32 %v2084_v19, %v140_v25  ;;  %v161_v35 = vand.u32 4294901760, %v2106_v29 }
   0x9   :  { %1560 = vmatprep.subr.mxu0 %v2003_v2  ;;  %v148_v39 = vsub.f32 %v2087_v20, %v147_v26  ;;  %v168_v41 = vand.u32 4294901760, %v2117_v33  ;;  %v2139_v43 = vsub.f32 %v24_v13, %v2092_v23  ;;  %v155_v45 = vsub.f32 %v2095_v24, %v154_v32 }
   0xa   :  { %1561 = vmatpush3.msra.mxu0 %v2051_v9  ;;  %v128_v37 = vand.u32 4294901760, %v127_v30  ;;  %v135_v38 = vand.u32 4294901760, %v134_v31  ;;  %v142_v44 = vand.u32 4294901760, %v141_v34  ;;  %v2145_v46 = vand.u32 4294901760, %v21_v36 }
   0xb   :  { %1562 = vmatprep.subr.mxu0 %v2003_v2  ;;  %v2148_v47 = vsub.f32 %v23_v18, %v2100_v27  ;;  %v162_v48 = vsub.f32 %v2106_v29, %v161_v35  ;;  %v149_v51 = vand.u32 4294901760, %v148_v39  ;;  %v2162_v52 = vand.u32 4294901760, %v20_v42 }
   0xc   :  { %1563 = vmatpush3.msra.mxu0 %v2053_v10  ;;  %1590 = vmatpush3.msra.mxu1 %v128_v37  ;;  %v175_v53 = vand.u32 4294901760, %v2139_v43  ;;  %v2166_v54 = vsub.f32 %v22_v28, %v2131_v40  ;;  %v169_v55 = vsub.f32 %v2117_v33, %v168_v41  ;;  %v156_v58 = vand.u32 4294901760, %v155_v45 }
   0xd   :  { %1564 = vmatprep.subr.mxu0 %v2003_v2  ;;  %1591 = vmatprep.subr.mxu1 %v2003_v2  ;;  %v182_v56 = vand.u32 4294901760, %v2148_v47  ;;  %v2178_v59 = vand.u32 4294901760, %v19_v49  ;;  %v2181_v60 = vsub.f32 %v21_v36, %v2145_v46  ;;  %v2183_v61 = vand.u32 4294901760, %v15_v50 }
   0xe   :  { %1565 = vmatpush3.msra.mxu0 %v2072_v15  ;;  %1592 = vmatpush3.msra.mxu1 %v135_v38  ;;  %v163_v62 = vand.u32 4294901760, %v162_v48  ;;  %v176_v0 = vsub.f32 %v2139_v43, %v175_v53  ;;  %v2194_v1 = vand.u32 4294901760, %v18_v57  ;;  %v189_v5 = vand.u32 4294901760, %v2166_v54 }
   0xf   :  { %1566 = vmatprep.subr.mxu0 %v2003_v2  ;;  %1593 = vmatprep.subr.mxu1 %v2003_v2  ;;  %v2201_v7 = vsub.f32 %v20_v42, %v2162_v52  ;;  %v170_v11 = vand.u32 4294901760, %v169_v55  ;;  %v183_v12 = vsub.f32 %v2148_v47, %v182_v56  ;;  %v2209_v13 = vand.u32 4294901760, %v17_v63 }
  0x10   :  { %1567 = vmatpush3.msra.mxu0 %v2077_v17  ;;  %1594 = vmatpush3.msra.mxu1 %v142_v44  ;;  %v196_v18 = vand.u32 4294901760, %v2181_v60  ;;  %v2213_v28 = vsub.f32 %v15_v50, %v2183_v61  ;;  %v2216_v30 = vsub.f32 %v19_v49, %v2178_v59  ;;  %v2220_v31 = vand.u32 4294901760, %v16_v6 }
  0x11   :  { %1568 = vmatprep.subr.mxu0 %v2003_v2  ;;  %1595 = vmatprep.subr.mxu1 %v2003_v2  ;;  %v177_v34 = vand.u32 4294901760, %v176_v0  ;;  %v190_v36 = vsub.f32 %v2166_v54, %v189_v5  ;;  %v203_v37 = vand.u32 4294901760, %v2201_v7  ;;  %v2228_v38 = vsub.f32 %v18_v57, %v2194_v1 }
  0x12   :  { %1569 = vmatpush3.msra.mxu0 %v2092_v23  ;;  %1596 = vmatpush3.msra.mxu1 %v149_v51  ;;  %v184_v39 = vand.u32 4294901760, %v183_v12  ;;  %v197_v42 = vsub.f32 %v2181_v60, %v196_v18  ;;  %v2237_v44 = vand.u32 4294901760, %v2213_v28  ;;  %v210_v45 = vand.u32 4294901760, %v2216_v30 }
  0x13   :  { %1570 = vmatprep.subr.mxu0 %v2003_v2  ;;  %1597 = vmatprep.subr.mxu1 %v2003_v2  ;;  %v2241_v48 = vsub.f32 %v17_v63, %v2209_v13  ;;  %v191_v49 = vand.u32 4294901760, %v190_v36  ;;  %v204_v50 = vsub.f32 %v2201_v7, %v203_v37  ;;  %v217_v51 = vand.u32 4294901760, %v2228_v38 }
  0x14   :  { %1571 = vmatpush3.msra.mxu0 %v2100_v27  ;;  %1598 = vmatpush3.msra.mxu1 %v156_v58  ;;  %v2251_v55 = vsub.f32 %v16_v6, %v2220_v31  ;;  %v198_v57 = vand.u32 4294901760, %v197_v42  ;;  %v116_v58 = vsub.f32 %v2213_v28, %v2237_v44 }
  0x15   :  { %1572 = vmatprep.subr.mxu0 %v2003_v2  ;;  %1599 = vmatprep.subr.mxu1 %v2003_v2  ;;  %v224_v63 = vand.u32 4294901760, %v2241_v48  ;;  %v205_v0 = vand.u32 4294901760, %v204_v50  ;;  %v218_v6 = vsub.f32 %v2228_v38, %v217_v51 }
  0x16   :  { %1573 = vmatpush3.msra.mxu0 %v2131_v40  ;;  %1600 = vmatpush3.msra.mxu1 %v163_v62  ;;  %v211_v62 = vsub.f32 %v2216_v30, %v210_v45  ;;  %v2272_v12 = vand.u32 4294901760, %v116_v58 }
  0x17   :  { %1574 = vmatprep.subr.mxu0 %v2003_v2  ;;  %1601 = vmatprep.subr.mxu1 %v2003_v2  ;;  %v225_v36 = vsub.f32 %v2241_v48, %v224_v63 }
  0x18   :  { %1575 = vmatpush3.msra.mxu0 %v2145_v46  ;;  %1602 = vmatpush3.msra.mxu1 %v170_v11  ;;  %v231_v11 = vand.u32 4294901760, %v2251_v55 }
  0x19   :  { %1576 = vmatprep.subr.mxu0 %v2003_v2  ;;  %1603 = vmatprep.subr.mxu1 %v2003_v2 }
  0x1a   :  { %1577 = vmatpush3.msra.mxu0 %v2162_v52  ;;  %1604 = vmatpush3.msra.mxu1 %v177_v34  ;;  %v212_v34 = vand.u32 4294901760, %v211_v62  ;;  %v232_v42 = vsub.f32 %v2251_v55, %v231_v11 }
  0x1b   :  { %1578 = vmatprep.subr.mxu0 %v2003_v2  ;;  %1605 = vmatprep.subr.mxu1 %v2003_v2 }
  0x1c   :  { %1579 = vmatpush3.msra.mxu0 %v2178_v59  ;;  %1606 = vmatpush3.msra.mxu1 %v184_v39  ;;  %v219_v39 = vand.u32 4294901760, %v218_v6  ;;  %v233_v50 = vand.u32 4294901760, %v232_v42 }
  0x1d   :  { %1580 = vmatprep.subr.mxu0 %v2003_v2  ;;  %1607 = vmatprep.subr.mxu1 %v2003_v2 }
  0x1e   :  { %1581 = vmatpush3.msra.mxu0 %v2194_v1  ;;  %1608 = vmatpush3.msra.mxu1 %v191_v49  ;;  %v226_v49 = vand.u32 4294901760, %v225_v36 }
  0x1f   :  { %1582 = vmatprep.subr.mxu0 %v2003_v2  ;;  %1609 = vmatprep.subr.mxu1 %v2003_v2 }
  0x20   :  { %1583 = vmatpush3.msra.mxu0 %v2209_v13  ;;  %1610 = vmatpush3.msra.mxu1 %v198_v57 }
  0x21   :  { %1584 = vmatprep.subr.mxu0 %v2003_v2  ;;  %1611 = vmatprep.subr.mxu1 %v2003_v2 }
  0x22   :  { %1585 = vmatpush3.msra.mxu0 %v2220_v31  ;;  %1612 = vmatpush3.msra.mxu1 %v205_v0 }
  0x23   :  { %1613 = vmatprep.subr.mxu1 %v2003_v2  ;;  %1624 = vmatprep.subr.mxu0 %v2003_v2 }
  0x24   :  { %1587 = vmatmul.mubr.f32.vlgmr.msra.gmra.mxu0 %v2272_v12  ;;  %1614 = vmatpush3.msra.mxu1 %v212_v34 }
  0x25   :  { %1625 = vmatpush3.msra.mxu0 %v2070_v14  ;;  %1615 = vmatprep.subr.mxu1 %v2003_v2  ;;  %v685_v14 = vld [vmem:[%s2852_s2 + $0x60] sm:$0xff] }
  0x26   :  { %1626 = vmatprep.subr.mxu0 %v2003_v2  ;;  %1616 = vmatpush3.msra.mxu1 %v219_v39 }
  0x27   :  { %1627 = vmatpush3.msra.mxu0 %v2075_v16  ;;  %1617 = vmatprep.subr.mxu1 %v2003_v2 }
  0x28   :  { %1628 = vmatprep.subr.mxu0 %v2003_v2  ;;  %1618 = vmatpush3.msra.mxu1 %v226_v49  ;;  %v675_v49 = vld [vmem:[%s2852_s2 + $0x10] sm:$0xff] }
  0x29   :  { %1629 = vmatpush3.msra.mxu0 %v2084_v19  ;;  %1619 = vmatprep.subr.mxu1 %v2003_v2  ;;  %v684_v19 = vld [vmem:[%s2852_s2 + $0x58] sm:$0xff] }
  0x2a   :  { %1630 = vmatprep.subr.mxu0 %v2003_v2  ;;  %1620 = vmatpush3.msra.mxu1 %v233_v50 }
  0x2b   :  { %1631 = vmatpush3.msra.mxu0 %v2087_v20  ;;  %1622 = vmatmul.mubr.f32.vlgmr.msra.gmra.mxu1 %v2183_v61 }
  0x2c   :  { %1632 = vmatprep.subr.mxu0 %v2003_v2  ;;  %1659 = vmatprep.subr.mxu1 %v2003_v2 }
  0x2d   :  { %1633 = vmatpush3.msra.mxu0 %v2095_v24  ;;  %1660 = vmatpush3.msra.mxu1 %v2035_v3 }
  0x2e   :  { %1634 = vmatprep.subr.mxu0 %v2003_v2  ;;  %1661 = vmatprep.subr.mxu1 %v2003_v2 }
  0x2f   :  { %1635 = vmatpush3.msra.mxu0 %v2106_v29  ;;  %1662 = vmatpush3.msra.mxu1 %v2037_v4 }
  0x30   :  { %1636 = vmatprep.subr.mxu0 %v2003_v2  ;;  %1663 = vmatprep.subr.mxu1 %v2003_v2 }
  0x31   :  { %1637 = vmatpush3.msra.mxu0 %v2117_v33  ;;  %1664 = vmatpush3.msra.mxu1 %v2049_v8  ;;  %v681_v33 = vld [vmem:[%s2852_s2 + $0x40] sm:$0xff] }
  0x32   :  { %1638 = vmatprep.subr.mxu0 %v2003_v2  ;;  %1665 = vmatprep.subr.mxu1 %v2003_v2 }
  0x33   :  { %1639 = vmatpush3.msra.mxu0 %v2139_v43  ;;  %1666 = vmatpush3.msra.mxu1 %v2051_v9 }
  0x34   :  { %1640 = vmatprep.subr.mxu0 %v2003_v2  ;;  %1667 = vmatprep.subr.mxu1 %v2003_v2 }
  0x35   :  { %1641 = vmatpush3.msra.mxu0 %v2148_v47  ;;  %1668 = vmatpush3.msra.mxu1 %v2053_v10 }
  0x36   :  { %1642 = vmatprep.subr.mxu0 %v2003_v2  ;;  %1669 = vmatprep.subr.mxu1 %v2003_v2 }
  0x37   :  { %1643 = vmatpush3.msra.mxu0 %v2166_v54  ;;  %1670 = vmatpush3.msra.mxu1 %v2072_v15 }
  0x38   :  { %1644 = vmatprep.subr.mxu0 %v2003_v2  ;;  %1671 = vmatprep.subr.mxu1 %v2003_v2 }
  0x39   :  { %1645 = vmatpush3.msra.mxu0 %v2181_v60  ;;  %1672 = vmatpush3.msra.mxu1 %v2077_v17 }
  0x3a   :  { %1646 = vmatprep.subr.mxu0 %v2003_v2  ;;  %1673 = vmatprep.subr.mxu1 %v2003_v2 }
  0x3b   :  { %1647 = vmatpush3.msra.mxu0 %v2201_v7  ;;  %1674 = vmatpush3.msra.mxu1 %v2092_v23 }
  0x3c   :  { %1648 = vmatprep.subr.mxu0 %v2003_v2  ;;  %1675 = vmatprep.subr.mxu1 %v2003_v2 }
  0x3d   :  { %1649 = vmatpush3.msra.mxu0 %v2216_v30  ;;  %1676 = vmatpush3.msra.mxu1 %v2100_v27 }
  0x3e   :  { %1650 = vmatprep.subr.mxu0 %v2003_v2  ;;  %1677 = vmatprep.subr.mxu1 %v2003_v2 }
  0x3f   :  { %1651 = vmatpush3.msra.mxu0 %v2228_v38  ;;  %1678 = vmatpush3.msra.mxu1 %v2131_v40 }
  0x40   :  { %1652 = vmatprep.subr.mxu0 %v2003_v2  ;;  %1679 = vmatprep.subr.mxu1 %v2003_v2 }
  0x41   :  { %1653 = vmatpush3.msra.mxu0 %v2241_v48  ;;  %1680 = vmatpush3.msra.mxu1 %v2145_v46 }
  0x42   :  { %1654 = vmatprep.subr.mxu0 %v2003_v2  ;;  %1681 = vmatprep.subr.mxu1 %v2003_v2 }
  0x43   :  { %1655 = vmatpush3.msra.mxu0 %v2251_v55  ;;  %1656 = vmatprep.mubr.msk.f32.mxu0 %vm2004_vm0, %v2003_v2 }
  0x44   :  { %1682 = vmatpush3.msra.mxu1 %v2162_v52  ;;  %1657 = vmatmul.mubr.f32.vlgmr.msra.gmra.mxu0 %v2213_v28 }
  0x45   :  { %1683 = vmatprep.subr.mxu1 %v2003_v2  ;;  %1694 = vmatprep.subr.mxu0 %v2003_v2 }
  0x46   :  { %1684 = vmatpush3.msra.mxu1 %v2178_v59  ;;  %1695 = vmatpush3.msra.mxu0 %v126_v21 }
  0x47   :  { %1685 = vmatprep.subr.mxu1 %v2003_v2  ;;  %1696 = vmatprep.subr.mxu0 %v2003_v2 }
  0x48   :  { %1686 = vmatpush3.msra.mxu1 %v2194_v1  ;;  %1697 = vmatpush3.msra.mxu0 %v133_v22  ;;  %v683_v22 = vld [vmem:[%s2852_s2 + $0x50] sm:$0xff] }
  0x49   :  { %1687 = vmatprep.subr.mxu1 %v2003_v2  ;;  %1698 = vmatprep.subr.mxu0 %v2003_v2 }
  0x4a   :  { %1688 = vmatpush3.msra.mxu1 %v2209_v13  ;;  %1699 = vmatpush3.msra.mxu0 %v140_v25 }
  0x4b   :  { %1689 = vmatprep.subr.mxu1 %v2003_v2  ;;  %1700 = vmatprep.subr.mxu0 %v2003_v2 }
  0x4c   :  { %1690 = vmatpush3.msra.mxu1 %v2220_v31  ;;  %1691 = vmatprep.mubr.msk.f32.mxu1 %vm2004_vm0, %v2003_v2 }
  0x4d   :  { %1701 = vmatpush3.msra.mxu0 %v147_v26  ;;  %1692 = vmatmul.mubr.f32.vlgmr.msra.gmra.mxu1 %v2237_v44  ;;  %v682_v26 = vld [vmem:[%s2852_s2 + $0x48] sm:$0xff] }
  0x4e   :  { %1702 = vmatprep.subr.mxu0 %v2003_v2  ;;  %1729 = vmatprep.subr.mxu1 %v2003_v2 }
  0x4f   :  { %1703 = vmatpush3.msra.mxu0 %v154_v32  ;;  %1730 = vmatpush3.msra.mxu1 %v2035_v3  ;;  %v688_v3 = vld [vmem:[%s2852_s2 + $0x78] sm:$0xff] }
  0x50   :  { %1704 = vmatprep.subr.mxu0 %v2003_v2  ;;  %1731 = vmatprep.subr.mxu1 %v2003_v2 }
  0x51   :  { %1705 = vmatpush3.msra.mxu0 %v161_v35  ;;  %1732 = vmatpush3.msra.mxu1 %v2037_v4  ;;  %v687_v4 = vld [vmem:[%s2852_s2 + $0x70] sm:$0xff] }
  0x52   :  { %1706 = vmatprep.subr.mxu0 %v2003_v2  ;;  %1733 = vmatprep.subr.mxu1 %v2003_v2 }
  0x53   :  { %1707 = vmatpush3.msra.mxu0 %v168_v41  ;;  %1734 = vmatpush3.msra.mxu1 %v2049_v8  ;;  %v2417_v8 = vand.u32 4294901760, %v688_v3  ;;  %v2497_v41 = vand.u32 4294901760, %v682_v26 }
  0x54   :  { %1708 = vmatprep.subr.mxu0 %v2003_v2  ;;  %1735 = vmatprep.subr.mxu1 %v2003_v2 }
  0x55   :  { %1709 = vmatpush3.msra.mxu0 %v175_v53  ;;  %1736 = vmatpush3.msra.mxu1 %v2051_v9  ;;  %v686_v9 = vld [vmem:[%s2852_s2 + $0x68] sm:$0xff]  ;;  %v2440_v16 = vsub.f32 %v688_v3, %v2417_v8  ;;  %v2513_v53 = vand.u32 4294901760, %v681_v33  ;;  %v2526_v60 = vsub.f32 %v682_v26, %v2497_v41 }
  0x56   :  { %1710 = vmatprep.subr.mxu0 %v2003_v2  ;;  %1737 = vmatprep.subr.mxu1 %v2003_v2 }
  0x57   :  { %1711 = vmatpush3.msra.mxu0 %v182_v56  ;;  %1738 = vmatpush3.msra.mxu1 %v2053_v10  ;;  %v2427_v10 = vand.u32 4294901760, %v687_v4  ;;  %v783_v24 = vand.u32 4294901760, %v2440_v16  ;;  %v679_v56 = vld [vmem:[%s2852_s2 + $0x30] sm:$0xff]  ;;  %v2543_v30 = vsub.f32 %v681_v33, %v2513_v53  ;;  %v825_v57 = vand.u32 4294901760, %v2526_v60 }
  0x58   :  { %1712 = vmatprep.subr.mxu0 %v2003_v2  ;;  %1739 = vmatprep.subr.mxu1 %v2003_v2 }
  0x59   :  { %1713 = vmatpush3.msra.mxu0 %v189_v5  ;;  %1740 = vmatpush3.msra.mxu1 %v2072_v15  ;;  %v2434_v15 = vand.u32 4294901760, %v686_v9  ;;  %v2453_v20 = vsub.f32 %v687_v4, %v2427_v10  ;;  %v832_v6 = vand.u32 4294901760, %v2543_v30  ;;  %v826_v39 = vsub.f32 %v2526_v60, %v825_v57 }
  0x5a   :  { %1714 = vmatprep.subr.mxu0 %v2003_v2  ;;  %1741 = vmatprep.subr.mxu1 %v2003_v2 }
  0x5b   :  { %1715 = vmatpush3.msra.mxu0 %v196_v18  ;;  %1742 = vmatpush3.msra.mxu1 %v2077_v17  ;;  %v2444_v17 = vand.u32 4294901760, %v685_v14  ;;  %v2458_v21 = vsub.f32 %v686_v9, %v2434_v15  ;;  %v790_v29 = vand.u32 4294901760, %v2453_v20  ;;  %v833_v9 = vsub.f32 %v2543_v30, %v832_v6 }
  0x5c   :  { %1716 = vmatprep.subr.mxu0 %v2003_v2  ;;  %1743 = vmatprep.subr.mxu1 %v2003_v2  ;;  %v827_v26 = vand.u32 4294901760, %v826_v39 }
  0x5d   :  { %1717 = vmatpush3.msra.mxu0 %v203_v37  ;;  %1744 = vmatpush3.msra.mxu1 %v2092_v23  ;;  %v2467_v23 = vand.u32 4294901760, %v684_v19  ;;  %v2473_v25 = vsub.f32 %v685_v14, %v2444_v17  ;;  %v797_v32 = vand.u32 4294901760, %v2458_v21 }
  0x5e   :  { %1718 = vmatprep.subr.mxu0 %v2003_v2  ;;  %1745 = vmatprep.subr.mxu1 %v2003_v2 }
  0x5f   :  { %1719 = vmatpush3.msra.mxu0 %v210_v45  ;;  %1746 = vmatpush3.msra.mxu1 %v2100_v27  ;;  %v2480_v27 = vand.u32 4294901760, %v683_v22  ;;  %v2492_v35 = vsub.f32 %v684_v19, %v2467_v23  ;;  %v804_v43 = vand.u32 4294901760, %v2473_v25  ;;  %v798_v54 = vsub.f32 %v2458_v21, %v797_v32  ;;  %v677_v45 = vld [vmem:[%s2852_s2 + $0x20] sm:$0xff]  ;;  %v674_v19 = vld [vmem:[%s2852_s2 + $0x8] sm:$0xff] }
  0x60   :  { %1720 = vmatprep.subr.mxu0 %v2003_v2  ;;  %1747 = vmatprep.subr.mxu1 %v2003_v2  ;;  %v2572_v0 = vand.u32 4294901760, %v677_v45 }
  0x61   :  { %1721 = vmatpush3.msra.mxu0 %v217_v51  ;;  %1748 = vmatpush3.msra.mxu1 %v2131_v40  ;;  %v784_v40 = vsub.f32 %v2440_v16, %v783_v24  ;;  %v2508_v47 = vsub.f32 %v683_v22, %v2480_v27  ;;  %v811_v5 = vand.u32 4294901760, %v2492_v35  ;;  %v805_v7 = vsub.f32 %v2473_v25, %v804_v43 }
  0x62   :  { %1722 = vmatprep.subr.mxu0 %v2003_v2  ;;  %1749 = vmatprep.subr.mxu1 %v2003_v2  ;;  %v799_v38 = vand.u32 4294901760, %v798_v54  ;;  %v2597_v4 = vsub.f32 %v677_v45, %v2572_v0  ;;  %v2608_v22 = vand.u32 4294901760, %v675_v49  ;;  %v2623_v54 = vand.u32 4294901760, %v674_v19 }
  0x63   :  { %1723 = vmatpush3.msra.mxu0 %v224_v63  ;;  %1750 = vmatpush3.msra.mxu1 %v2145_v46  ;;  %v680_v46 = vld [vmem:[%s2852_s2 + $0x38] sm:$0xff]  ;;  %v818_v37 = vand.u32 4294901760, %v2508_v47  ;;  %v812_v51 = vsub.f32 %v2492_v35, %v811_v5  ;;  %v806_v58 = vand.u32 4294901760, %v805_v7 }
  0x64   :  { %1724 = vmatprep.subr.mxu0 %v2003_v2  ;;  %1751 = vmatprep.subr.mxu1 %v2003_v2  ;;  %v860_v7 = vand.u32 4294901760, %v2597_v4 }
  0x65   :  { %1725 = vmatpush3.msra.mxu0 %v231_v11  ;;  %1726 = vmatprep.mubr.msk.f32.mxu0 %vm2004_vm0, %v2003_v2  ;;  %v819_v63 = vsub.f32 %v2508_v47, %v818_v37  ;;  %v676_v11 = vld [vmem:[%s2852_s2 + $0x18] sm:$0xff]  ;;  %v813_v34 = vand.u32 4294901760, %v812_v51  ;;  %v2644_v51 = vsub.f32 %v674_v19, %v2623_v54 }
  0x66   :  { %1752 = vmatpush3.msra.mxu1 %v2162_v52  ;;  %1727 = vmatmul.mubr.f32.vlgmr.msra.gmra.mxu0 %v2183_v61  ;;  %v791_v52 = vsub.f32 %v2453_v20, %v790_v29  ;;  %v2593_v50 = vand.u32 4294901760, %v676_v11 }
  0x67   :  { %1753 = vmatprep.subr.mxu1 %v2003_v2  ;;  %1764 = vmatprep.subr.mxu0 %v2003_v2  ;;  %v820_v3 = vand.u32 4294901760, %v819_v63 }
  0x68   :  { %1754 = vmatpush3.msra.mxu1 %v2178_v59  ;;  %1765 = vmatpush3.msra.mxu0 %v2417_v8  ;;  %v785_v59 = vand.u32 4294901760, %v784_v40  ;;  %v792_v18 = vand.u32 4294901760, %v791_v52  ;;  %v2621_v52 = vsub.f32 %v676_v11, %v2593_v50  ;;  %v861_v11 = vsub.f32 %v2597_v4, %v860_v7 }
  0x69   :  { %1755 = vmatprep.subr.mxu1 %v2003_v2  ;;  %1766 = vmatprep.subr.mxu0 %v2003_v2 }
  0x6a   :  { %1756 = vmatpush3.msra.mxu1 %v2194_v1  ;;  %1767 = vmatpush3.msra.mxu0 %v2427_v10  ;;  %v2528_v1 = vand.u32 4294901760, %v680_v46  ;;  %v862_v19 = vand.u32 4294901760, %v861_v11 }
  0x6b   :  { %1757 = vmatprep.subr.mxu1 %v2003_v2  ;;  %1768 = vmatprep.subr.mxu0 %v2003_v2 }
  0x6c   :  { %1758 = vmatpush3.msra.mxu1 %v2209_v13  ;;  %1769 = vmatpush3.msra.mxu0 %v2434_v15  ;;  %v678_v13 = vld [vmem:[%s2852_s2 + $0x28] sm:$0xff]  ;;  %v2555_v48 = vsub.f32 %v680_v46, %v2528_v1  ;;  %v673_v46 = vld [vmem:[%s2852_s2] sm:$0xff] }
  0x6d   :  { %1759 = vmatprep.subr.mxu1 %v2003_v2  ;;  %1770 = vmatprep.subr.mxu0 %v2003_v2  ;;  %v2560_v55 = vand.u32 4294901760, %v678_v13 }
  0x6e   :  { %1760 = vmatpush3.msra.mxu1 %v2220_v31  ;;  %1761 = vmatprep.mubr.msk.f32.mxu1 %vm2004_vm0, %v2003_v2  ;;  %v2545_v31 = vand.u32 4294901760, %v679_v56  ;;  %v839_v42 = vand.u32 4294901760, %v2555_v48 }
  0x6f   :  { %1771 = vmatpush3.msra.mxu0 %v2444_v17  ;;  %1762 = vmatmul.mubr.f32.vlgmr.msra.gmra.mxu1 %v2183_v61  ;;  %v2582_v36 = vsub.f32 %v678_v13, %v2560_v55  ;;  %v2633_v13 = vsub.f32 %v675_v49, %v2608_v22 }
  0x70   :  { %1772 = vmatprep.subr.mxu0 %v2003_v2  ;;  %1799 = vmatprep.subr.mxu1 %v2003_v2  ;;  %v2567_v62 = vsub.f32 %v679_v56, %v2545_v31  ;;  %v840_v33 = vsub.f32 %v2555_v48, %v839_v42  ;;  %v834_v56 = vand.u32 4294901760, %v833_v9  ;;  %v881_v9 = vand.u32 4294901760, %v2644_v51 }
  0x71   :  { %1773 = vmatpush3.msra.mxu0 %v2467_v23  ;;  %1800 = vmatpush3.msra.mxu1 %v785_v59  ;;  %v853_v40 = vand.u32 4294901760, %v2582_v36  ;;  %v874_v39 = vand.u32 4294901760, %v2633_v13 }
  0x72   :  { %1774 = vmatprep.subr.mxu0 %v2003_v2  ;;  %1801 = vmatprep.subr.mxu1 %v2003_v2  ;;  %v846_v14 = vand.u32 4294901760, %v2567_v62 }
  0x73   :  { %1775 = vmatpush3.msra.mxu0 %v2480_v27  ;;  %1802 = vmatpush3.msra.mxu1 %v792_v18  ;;  %v2635_v18 = vand.u32 4294901760, %v673_v46  ;;  %v854_v45 = vsub.f32 %v2582_v36, %v853_v40 }
  0x74   :  { %1776 = vmatprep.subr.mxu0 %v2003_v2  ;;  %1803 = vmatprep.subr.mxu1 %v2003_v2  ;;  %v847_v59 = vsub.f32 %v2567_v62, %v846_v14 }
  0x75   :  { %1777 = vmatpush3.msra.mxu0 %v2497_v41  ;;  %1804 = vmatpush3.msra.mxu1 %v799_v38  ;;  %v841_v38 = vand.u32 4294901760, %v840_v33  ;;  %v855_v49 = vand.u32 4294901760, %v854_v45 }
  0x76   :  { %1778 = vmatprep.subr.mxu0 %v2003_v2  ;;  %1805 = vmatprep.subr.mxu1 %v2003_v2  ;;  %v848_v63 = vand.u32 4294901760, %v847_v59 }
  0x77   :  { %1779 = vmatpush3.msra.mxu0 %v2513_v53  ;;  %1806 = vmatpush3.msra.mxu1 %v806_v58  ;;  %v867_v58 = vand.u32 4294901760, %v2621_v52 }
  0x78   :  { %1780 = vmatprep.subr.mxu0 %v2003_v2  ;;  %1807 = vmatprep.subr.mxu1 %v2003_v2 }
  0x79   :  { %1781 = vmatpush3.msra.mxu0 %v2528_v1  ;;  %1808 = vmatpush3.msra.mxu1 %v813_v34  ;;  %v2654_v34 = vsub.f32 %v673_v46, %v2635_v18 }
  0x7a   :  { %1782 = vmatprep.subr.mxu0 %v2003_v2  ;;  %1809 = vmatprep.subr.mxu1 %v2003_v2 }
  0x7b   :  { %1783 = vmatpush3.msra.mxu0 %v2545_v31  ;;  %1810 = vmatpush3.msra.mxu1 %v820_v3  ;;  %v868_v3 = vsub.f32 %v2621_v52, %v867_v58  ;;  %v888_v33 = vand.u32 4294901760, %v2654_v34 }
  0x7c   :  { %1784 = vmatprep.subr.mxu0 %v2003_v2  ;;  %1811 = vmatprep.subr.mxu1 %v2003_v2 }
  0x7d   :  { %1785 = vmatpush3.msra.mxu0 %v2560_v55  ;;  %1812 = vmatpush3.msra.mxu1 %v827_v26  ;;  %v875_v26 = vsub.f32 %v2633_v13, %v874_v39  ;;  %v869_v46 = vand.u32 4294901760, %v868_v3 }
  0x7e   :  { %1786 = vmatprep.subr.mxu0 %v2003_v2  ;;  %1813 = vmatprep.subr.mxu1 %v2003_v2 }
  0x7f   :  { %1787 = vmatpush3.msra.mxu0 %v2572_v0  ;;  %1814 = vmatpush3.msra.mxu1 %v834_v56  ;;  %v882_v56 = vsub.f32 %v2644_v51, %v881_v9  ;;  %v876_v59 = vand.u32 4294901760, %v875_v26 }
  0x80   :  { %1788 = vmatprep.subr.mxu0 %v2003_v2  ;;  %1815 = vmatprep.subr.mxu1 %v2003_v2 }
  0x81   :  { %1789 = vmatpush3.msra.mxu0 %v2593_v50  ;;  %1816 = vmatpush3.msra.mxu1 %v841_v38  ;;  %v889_v38 = vsub.f32 %v2654_v34, %v888_v33  ;;  %v883_v45 = vand.u32 4294901760, %v882_v56 }
  0x82   :  { %1790 = vmatprep.subr.mxu0 %v2003_v2  ;;  %1817 = vmatprep.subr.mxu1 %v2003_v2 }
  0x83   :  { %1791 = vmatpush3.msra.mxu0 %v2608_v22  ;;  %1818 = vmatpush3.msra.mxu1 %v848_v63  ;;  %v890_v63 = vand.u32 4294901760, %v889_v38 }
  0x84   :  { %1792 = vmatprep.subr.mxu0 %v2003_v2  ;;  %1819 = vmatprep.subr.mxu1 %v2003_v2 }
  0x85   :  { %1793 = vmatpush3.msra.mxu0 %v2623_v54  ;;  %1820 = vmatpush3.msra.mxu1 %v855_v49 }
  0x86   :  { %1794 = vmatprep.subr.mxu0 %v2003_v2  ;;  %1821 = vmatprep.subr.mxu1 %v2003_v2 }
  0x87   :  { %1795 = vmatpush3.msra.mxu0 %v2635_v18  ;;  %1822 = vmatpush3.msra.mxu1 %v862_v19 }
  0x88   :  { %1796 = vmatprep.mubr.msk.f32.mxu0 %vm2004_vm0, %v2003_v2  ;;  %1823 = vmatprep.subr.mxu1 %v2003_v2 }
  0x89   :  { %1834 = vmatprep.subr.mxu0 %v2003_v2  ;;  %1797 = vmatmul.mubr.f32.vlgmr.msra.gmra.mxu0 %v2272_v12 }
  0x8a   :  { %1824 = vmatpush3.msra.mxu1 %v869_v46  ;;  %1835 = vmatpush3.msra.mxu0 %v2440_v16 }
  0x8b   :  { %1825 = vmatprep.subr.mxu1 %v2003_v2  ;;  %1836 = vmatprep.subr.mxu0 %v2003_v2 }
  0x8c   :  { %1826 = vmatpush3.msra.mxu1 %v876_v59  ;;  %1837 = vmatpush3.msra.mxu0 %v2453_v20 }
  0x8d   :  { %1827 = vmatprep.subr.mxu1 %v2003_v2  ;;  %1838 = vmatprep.subr.mxu0 %v2003_v2 }
  0x8e   :  { %1828 = vmatpush3.msra.mxu1 %v883_v45  ;;  %1839 = vmatpush3.msra.mxu0 %v2458_v21 }
  0x8f   :  { %1829 = vmatprep.subr.mxu1 %v2003_v2  ;;  %1840 = vmatprep.subr.mxu0 %v2003_v2 }
  0x90   :  { %1830 = vmatpush3.msra.mxu1 %v890_v63  ;;  %1831 = vmatprep.mubr.msk.f32.mxu1 %vm2004_vm0, %v2003_v2 }
  0x91   :  { %1841 = vmatpush3.msra.mxu0 %v2473_v25  ;;  %1832 = vmatmul.mubr.f32.vlgmr.msra.gmra.mxu1 %v2183_v61 }
  0x92   :  { %1842 = vmatprep.subr.mxu0 %v2003_v2  ;;  %1869 = vmatprep.subr.mxu1 %v2003_v2 }
  0x93   :  { %1843 = vmatpush3.msra.mxu0 %v2492_v35  ;;  %1870 = vmatpush3.msra.mxu1 %v2417_v8 }
  0x94   :  { %1844 = vmatprep.subr.mxu0 %v2003_v2  ;;  %1871 = vmatprep.subr.mxu1 %v2003_v2 }
  0x95   :  { %1845 = vmatpush3.msra.mxu0 %v2508_v47  ;;  %1872 = vmatpush3.msra.mxu1 %v2427_v10 }
  0x96   :  { %1846 = vmatprep.subr.mxu0 %v2003_v2  ;;  %1873 = vmatprep.subr.mxu1 %v2003_v2 }
  0x97   :  { %1847 = vmatpush3.msra.mxu0 %v2526_v60  ;;  %1874 = vmatpush3.msra.mxu1 %v2434_v15 }
  0x98   :  { %1848 = vmatprep.subr.mxu0 %v2003_v2  ;;  %1875 = vmatprep.subr.mxu1 %v2003_v2 }
  0x99   :  { %1849 = vmatpush3.msra.mxu0 %v2543_v30  ;;  %1876 = vmatpush3.msra.mxu1 %v2444_v17 }
  0x9a   :  { %1850 = vmatprep.subr.mxu0 %v2003_v2  ;;  %1877 = vmatprep.subr.mxu1 %v2003_v2 }
  0x9b   :  { %1851 = vmatpush3.msra.mxu0 %v2555_v48  ;;  %1878 = vmatpush3.msra.mxu1 %v2467_v23 }
  0x9c   :  { %1852 = vmatprep.subr.mxu0 %v2003_v2  ;;  %1879 = vmatprep.subr.mxu1 %v2003_v2 }
  0x9d   :  { %1853 = vmatpush3.msra.mxu0 %v2567_v62  ;;  %1880 = vmatpush3.msra.mxu1 %v2480_v27 }
  0x9e   :  { %1854 = vmatprep.subr.mxu0 %v2003_v2  ;;  %1881 = vmatprep.subr.mxu1 %v2003_v2 }
  0x9f   :  { %1855 = vmatpush3.msra.mxu0 %v2582_v36  ;;  %1882 = vmatpush3.msra.mxu1 %v2497_v41 }
  0xa0   :  { %1856 = vmatprep.subr.mxu0 %v2003_v2  ;;  %1883 = vmatprep.subr.mxu1 %v2003_v2 }
  0xa1   :  { %1857 = vmatpush3.msra.mxu0 %v2597_v4  ;;  %1884 = vmatpush3.msra.mxu1 %v2513_v53 }
  0xa2   :  { %1858 = vmatprep.subr.mxu0 %v2003_v2  ;;  %1885 = vmatprep.subr.mxu1 %v2003_v2 }
  0xa3   :  { %1859 = vmatpush3.msra.mxu0 %v2621_v52  ;;  %1886 = vmatpush3.msra.mxu1 %v2528_v1 }
  0xa4   :  { %1860 = vmatprep.subr.mxu0 %v2003_v2  ;;  %1887 = vmatprep.subr.mxu1 %v2003_v2 }
  0xa5   :  { %1861 = vmatpush3.msra.mxu0 %v2633_v13  ;;  %1888 = vmatpush3.msra.mxu1 %v2545_v31 }
  0xa6   :  { %1862 = vmatprep.subr.mxu0 %v2003_v2  ;;  %1889 = vmatprep.subr.mxu1 %v2003_v2 }
  0xa7   :  { %1863 = vmatpush3.msra.mxu0 %v2644_v51  ;;  %1890 = vmatpush3.msra.mxu1 %v2560_v55 }
  0xa8   :  { %1864 = vmatprep.subr.mxu0 %v2003_v2  ;;  %1891 = vmatprep.subr.mxu1 %v2003_v2 }
  0xa9   :  { %1865 = vmatpush3.msra.mxu0 %v2654_v34  ;;  %1866 = vmatprep.mubr.msk.f32.mxu0 %vm2004_vm0, %v2003_v2 }
  0xaa   :  { %1892 = vmatpush3.msra.mxu1 %v2572_v0  ;;  %1867 = vmatmul.mubr.f32.vlgmr.msra.gmra.mxu0 %v2213_v28 }
  0xab   :  { %1893 = vmatprep.subr.mxu1 %v2003_v2  ;;  %1904 = vmatprep.subr.mxu0 %v2003_v2 }
  0xac   :  { %1894 = vmatpush3.msra.mxu1 %v2593_v50  ;;  %1905 = vmatpush3.msra.mxu0 %v783_v24 }
  0xad   :  { %1895 = vmatprep.subr.mxu1 %v2003_v2  ;;  %1906 = vmatprep.subr.mxu0 %v2003_v2 }
  0xae   :  { %1896 = vmatpush3.msra.mxu1 %v2608_v22  ;;  %1907 = vmatpush3.msra.mxu0 %v790_v29 }
  0xaf   :  { %1897 = vmatprep.subr.mxu1 %v2003_v2  ;;  %1908 = vmatprep.subr.mxu0 %v2003_v2 }
  0xb0   :  { %1898 = vmatpush3.msra.mxu1 %v2623_v54  ;;  %1909 = vmatpush3.msra.mxu0 %v797_v32 }
  0xb1   :  { %1899 = vmatprep.subr.mxu1 %v2003_v2  ;;  %1910 = vmatprep.subr.mxu0 %v2003_v2 }
  0xb2   :  { %1900 = vmatpush3.msra.mxu1 %v2635_v18  ;;  %1901 = vmatprep.mubr.msk.f32.mxu1 %vm2004_vm0, %v2003_v2 }
  0xb3   :  { %1911 = vmatpush3.msra.mxu0 %v804_v43  ;;  %1902 = vmatmul.mubr.f32.vlgmr.msra.gmra.mxu1 %v2237_v44 }
  0xb4   :  { %1912 = vmatprep.subr.mxu0 %v2003_v2  ;;  %1939 = vmatprep.subr.mxu1 %v2003_v2 }
  0xb5   :  { %1913 = vmatpush3.msra.mxu0 %v811_v5  ;;  %1940 = vmatpush3.msra.mxu1 %v2417_v8 }
  0xb6   :  { %1914 = vmatprep.subr.mxu0 %v2003_v2  ;;  %1941 = vmatprep.subr.mxu1 %v2003_v2 }
  0xb7   :  { %1915 = vmatpush3.msra.mxu0 %v818_v37  ;;  %1942 = vmatpush3.msra.mxu1 %v2427_v10 }
  0xb8   :  { %1916 = vmatprep.subr.mxu0 %v2003_v2  ;;  %1943 = vmatprep.subr.mxu1 %v2003_v2 }
  0xb9   :  { %1917 = vmatpush3.msra.mxu0 %v825_v57  ;;  %1944 = vmatpush3.msra.mxu1 %v2434_v15 }
  0xba   :  { %1918 = vmatprep.subr.mxu0 %v2003_v2  ;;  %1945 = vmatprep.subr.mxu1 %v2003_v2 }
  0xbb   :  { %1919 = vmatpush3.msra.mxu0 %v832_v6  ;;  %1946 = vmatpush3.msra.mxu1 %v2444_v17 }
  0xbc   :  { %1920 = vmatprep.subr.mxu0 %v2003_v2  ;;  %1947 = vmatprep.subr.mxu1 %v2003_v2 }
  0xbd   :  { %1921 = vmatpush3.msra.mxu0 %v839_v42  ;;  %1948 = vmatpush3.msra.mxu1 %v2467_v23 }
  0xbe   :  { %1922 = vmatprep.subr.mxu0 %v2003_v2  ;;  %1949 = vmatprep.subr.mxu1 %v2003_v2 }
  0xbf   :  { %1923 = vmatpush3.msra.mxu0 %v846_v14  ;;  %1950 = vmatpush3.msra.mxu1 %v2480_v27 }
  0xc0   :  { %1924 = vmatprep.subr.mxu0 %v2003_v2  ;;  %1951 = vmatprep.subr.mxu1 %v2003_v2 }
  0xc1   :  { %1925 = vmatpush3.msra.mxu0 %v853_v40  ;;  %1952 = vmatpush3.msra.mxu1 %v2497_v41 }
  0xc2   :  { %1926 = vmatprep.subr.mxu0 %v2003_v2  ;;  %1953 = vmatprep.subr.mxu1 %v2003_v2 }
  0xc3   :  { %1927 = vmatpush3.msra.mxu0 %v860_v7  ;;  %1954 = vmatpush3.msra.mxu1 %v2513_v53 }
  0xc4   :  { %1928 = vmatprep.subr.mxu0 %v2003_v2  ;;  %1955 = vmatprep.subr.mxu1 %v2003_v2 }
  0xc5   :  { %1929 = vmatpush3.msra.mxu0 %v867_v58  ;;  %1956 = vmatpush3.msra.mxu1 %v2528_v1 }
  0xc6   :  { %1930 = vmatprep.subr.mxu0 %v2003_v2  ;;  %1957 = vmatprep.subr.mxu1 %v2003_v2 }
  0xc7   :  { %1931 = vmatpush3.msra.mxu0 %v874_v39  ;;  %1958 = vmatpush3.msra.mxu1 %v2545_v31 }
  0xc8   :  { %1932 = vmatprep.subr.mxu0 %v2003_v2  ;;  %1959 = vmatprep.subr.mxu1 %v2003_v2 }
  0xc9   :  { %1933 = vmatpush3.msra.mxu0 %v881_v9  ;;  %1960 = vmatpush3.msra.mxu1 %v2560_v55 }
  0xca   :  { %1934 = vmatprep.subr.mxu0 %v2003_v2  ;;  %1961 = vmatprep.subr.mxu1 %v2003_v2 }
  0xcb   :  { %1935 = vmatpush3.msra.mxu0 %v888_v33  ;;  %1936 = vmatprep.mubr.msk.f32.mxu0 %vm2004_vm0, %v2003_v2 }
  0xcc   :  { %1962 = vmatpush3.msra.mxu1 %v2572_v0  ;;  %1937 = vmatmul.mubr.f32.vlgmr.msra.gmra.mxu0 %v2183_v61 }
  0xcd   :  { %1963 = vmatprep.subr.mxu1 %v2003_v2  ;;  %1971 = vmatprep.mubr.msk.f32.mxu1 %vm2004_vm0, %v2003_v2 }
  0xce   :  { %1964 = vmatpush3.msra.mxu1 %v2593_v50 }
  0xcf   :  { %1965 = vmatprep.subr.mxu1 %v2003_v2 }
  0xd0   :  { %1966 = vmatpush3.msra.mxu1 %v2608_v22 }
  0xd1   :  { %1967 = vmatprep.subr.mxu1 %v2003_v2 }
  0xd2   :  { %1968 = vmatpush3.msra.mxu1 %v2623_v54 }
  0xd3   :  { %1969 = vmatprep.subr.mxu1 %v2003_v2 }
  0xd4   :  { %1970 = vmatpush3.msra.mxu1 %v2635_v18 }
  0xd5   :  { %1972 = vmatmul.mubr.f32.vlgmr.msra.gmra.mxu1 %v2183_v61 }
  0xe4   :  { %v119_v28 = vpop.f32.mrf.mxu0 }
  0xe6   :  { %v1588_v44 = vpop.f32.mrf.mxu0 }
  0xeb   :  { %v270_v12 = vpop.f32.mrf.mxu1 }
  0xec   :  { %v271_v8 = vadd.f32 %v270_v12, %v119_v28 }
  0xed   :  { %v1623_v10 = vpop.f32.mrf.mxu1 }
 0x104   :  { %v374_v15 = vpop.f32.mrf.mxu0 }
 0x105   :  { %v375_v16 = vadd.f32 %v374_v15, %v271_v8 }
 0x106   :  { %v1658_v17 = vpop.f32.mrf.mxu0 }
 0x10d   :  { %v463_v20 = vpop.f32.mrf.mxu1 }
 0x10e   :  { %v464_v21 = vadd.f32 %v463_v20, %v375_v16 }
 0x10f   :  { %v1693_v23 = vpop.f32.mrf.mxu1 }
 0x126   :  { %v582_v24 = vpop.f32.mrf.mxu0 }
 0x127   :  { %v583_v25 = vadd.f32 %v582_v24, %v464_v21 }
 0x128   :  { %v1728_v27 = vpop.f32.mrf.mxu0 }
 0x12f   :  { %v669_v29 = vpop.f32.mrf.mxu1 }
 0x130   :  { %v670_v2 = vadd.f32 %v669_v29, %v583_v25 }
 0x131   :  { %v1763_v32 = vpop.f32.mrf.mxu1 }
 0x149   :  { %v776_v35 = vpop.f32.mrf.mxu0 }
 0x14a   :  { %v777_v5 = vadd.f32 1e-30, %v776_v35 }
 0x14b   :  { %v1798_v41 = vpop.f32.mrf.mxu0 }
 0x151   :  { %v927_v61 = vpop.f32.mrf.mxu1 }
 0x152   :  { %v928_v31 = vadd.f32 %v927_v61, %v777_v5 }
 0x153   :  { %v1833_v43 = vpop.f32.mrf.mxu1 }
 0x16a   :  { %v1031_v47 = vpop.f32.mrf.mxu0 }
 0x16b   :  { %v1032_v48 = vadd.f32 %v1031_v47, %v928_v31 }
 0x16c   :  { %v1868_v53 = vpop.f32.mrf.mxu0 }
 0x173   :  { %v1120_v60 = vpop.f32.mrf.mxu1 }
 0x174   :  { %v1121_v55 = vadd.f32 %v1120_v60, %v1032_v48 }
 0x175   :  { %v1903_v1 = vpop.f32.mrf.mxu1 }
 0x18c   :  { %v1239_v30 = vpop.f32.mrf.mxu0 }
 0x18d   :  { %v1240_v57 = vadd.f32 %v1239_v30, %v1121_v55 }
 0x18e   :  { %v1938_v37 = vpop.f32.mrf.mxu0 }
 0x195   :  { %v1326_v62 = vpop.f32.mrf.mxu1 }
 0x196   :  { %v1327_v0 = vadd.f32 %v1326_v62, %v1240_v57 }
 0x197   :  { %v1973_v6 = vpop.f32.mrf.mxu1 }
 0x198   :  { %1979 = vrcp.f32 %v1327_v0 }
 0x1a5   :  { %v1980_v36 = vpop.eup %1979 }
 0x1a6   :  { %v1331_v42 = vmul.f32 %v1980_v36, %v670_v2 }
 0x1a8   :  { %1333 = vst.msk [vmem:[#allocation2] sm:$0xff] %vm1332_vm1, %v1331_v42 }
 0x1a9   :  { %1338 = vsyncadd [#allocation3], 96  ;;  %s2005_s2 = smov [#allocation2]  }
 0x1aa   :  { %s1339_s20 = sshll.u32 %s2005_s2, 4  ;;  %s1340_s20 = int_to_ptr.vmem [resolvable:$true] %s1339_s20 }
 0x1ab   :  { %s1981_s21 = scalar_lea.vmem %s1340_s20, 32  ;;  %s1985_s22 = scalar_lea.vmem %s1340_s20, 128 }
 0x1ac   :  { %p1982_p0 = scmp.ne.s32.totalorder %s1340_s20, %s1981_s21  ;;  %p1986_p1 = scmp.lt.s32.totalorder %s1340_s20, %s1340_s20 }
 0x1ad   :  { %p1987_p2 = scmp.lt.s32.totalorder %s1985_s22, %s1981_s21 }
 0x1af   :  { %p1988_p3 = por %p1987_p2, %p1986_p1 }
 0x1b1   :  { %p1989_p4 = pnand %p1988_p3, %p1982_p0 }
 0x1b3   :  { %1992 = shalt.err (!%p1989_p4)
}
 0x1b4   :  { %s2006_s23 = smov 32   ;;  %s2007_s24 = smov 2  }
 0x1b5   :  { %1345 = dma.vmem_to_hbm [thread:$0]  %s1340_s20, 32, %s2853_s3, [#allocation3], %s2006_s23, %s2006_s23, %s2007_s24  }
 0x1b6   :  { %2001 = dma.done.wait [#allocation3], 128  }
 0x1b7   :  { %2002 = vsyncadd [#allocation3], 4294967168 }
 0x1b8   :  { %1349 = vsyncpa [#allocation3], 1 }

</bundles_post_ra>
